<compile_context>
chip_gen: v7x
topology: tpu7x:2x2x1
jax: 0.10.0
libtpu: 0.0.40
codegen_flags: <defaults>
</compile_context>

<pallas_src>
import functools

import jax
import jax.numpy as jnp
from jax.experimental import pallas as pl
from jax.experimental.pallas import tpu as pltpu

# Pallas dispatch thresholds (see header).  TODO(synk): benchmark-tune the
# lane threshold; 64 = half a vreg of lanes.
PALLAS_MIN_K = 8
PALLAS_MIN_COUT = 8
PALLAS_MIN_LANE = 64


# ----------------------------------------------------------------------------
# Pallas kernel: one (Cout x K) @ (K x L) matmul per batch element, fused
# f32 bias + activation epilogue, bf16 output.  All blocks are full-extent.
# ----------------------------------------------------------------------------
def _bmm_kernel(w_ref, x_ref, b_ref, o_ref, *, act):
    y = jnp.dot(w_ref[...], x_ref[...], preferred_element_type=jnp.float32)
    y = y + b_ref[...]                       # (Cout, 1) broadcast over lanes
    if act == "relu":
        y = jnp.maximum(y, 0.0)
    elif act == "tanh":
        y = jnp.tanh(y)
    elif act == "sigmoid":
        y = jax.nn.sigmoid(y)
    o_ref[...] = y.astype(o_ref.dtype)


def _pallas_bmm(Wm, patches, bias, act):
    """Wm (Cout,K) bf16, patches (B,K,L) bf16, bias (Cout,1) f32 -> (B,Cout,L) bf16."""
    B, K, L = patches.shape
    Cout = Wm.shape[0]
    if Wm.dtype != jnp.bfloat16:
        Wm = Wm.astype(jnp.bfloat16)
    if patches.dtype != jnp.bfloat16:
        patches = patches.astype(jnp.bfloat16)
    if bias.dtype != jnp.float32:
        bias = bias.astype(jnp.float32)

    return pl.pallas_call(
        functools.partial(_bmm_kernel, act=act),
        out_shape=jax.ShapeDtypeStruct((B, Cout, L), jnp.bfloat16),
        grid_spec=pltpu.PrefetchScalarGridSpec(
            num_scalar_prefetch=0,
            grid=(B,),                                    # batch only
            in_specs=[
                pl.BlockSpec((Cout, K), lambda b: (0, 0)),        # weights
                pl.BlockSpec((None, K, L), lambda b: (b, 0, 0)),  # patches[b]
                pl.BlockSpec((Cout, 1), lambda b: (0, 0)),        # bias
            ],
            out_specs=pl.BlockSpec((None, Cout, L), lambda b: (b, 0, 0)),
        ),
        compiler_params=pltpu.CompilerParams(
            dimension_semantics=("parallel",)),           # megacore over batch
    )(Wm, patches, bias)


def _apply_act(y, act):
    if act == "relu":
        return jnp.maximum(y, 0.0)
    if act == "tanh":
        return jnp.tanh(y)
    if act == "sigmoid":
        return jax.nn.sigmoid(y)
    return y


def _xla_bmm(Wm, patches, bias, act):
    y = jnp.einsum('ok,bkl->bol', Wm.astype(jnp.float32),
                   patches.astype(jnp.float32))
    y = _apply_act(y + bias.astype(jnp.float32)[None], act)
    return y.astype(jnp.bfloat16)


def conv_matmul(Wm, patches, bias, act="none"):
    """Batched W (Cout,K) @ patches (B,K,L) + bias, optional fused activation."""
    B, K, L = patches.shape
    Cout = Wm.shape[0]
    if K >= PALLAS_MIN_K and Cout >= PALLAS_MIN_COUT and L >= PALLAS_MIN_LANE:
        return _pallas_bmm(Wm, patches, bias, act)
    return _xla_bmm(Wm, patches, bias, act)


# ----------------------------------------------------------------------------
# Conv2d with kernel (1, k) on NCHW (B, C, N, T) == im2col + matmul.
# Channel-first keeps K on sublanes and the large N*Tout axis on lanes
# (lane-dense output); im2col is k strided slices + reshape, no transposes.
# ----------------------------------------------------------------------------
def conv1xk(x, Wm, bias, stride=1, act="none"):
    B, Cin, N, T = x.shape
    Cout, Kdim = Wm.shape
    k = Kdim // Cin
    if k == 1 and stride == 1:
        Tout = T
        patches = x.reshape(B, Cin, N * T)                 # pure reshape
    else:
        Tout = (T - k) // stride + 1
        cols = [x[:, :, :, j:j + (Tout - 1) * stride + 1:stride]
                for j in range(k)]
        patches = jnp.stack(cols, axis=2).reshape(B, Cin * k, N * Tout)
    y = conv_matmul(Wm, patches, bias, act)                # (B, Cout, N*Tout)
    return y.reshape(B, Cout, N, Tout)


# ----------------------------------------------------------------------------
# Sub-blocks of MSG.
# ----------------------------------------------------------------------------
def multi_scale_block(rp, cfg, x):
    # TODO(synk): multi_scale_block source unavailable; start 1x1 conv then
    # per-layer (1,k) convs (stride 2 after the first), truncated to length_set.
    h = conv1xk(x, rp["msb_start_W"], rp["msb_start_b"])
    scales = []
    for i in range(cfg["layers"]):
        stride = 1 if i == 0 else 2
        h = conv1xk(h, rp[f"msb_conv_{i}_W"], rp[f"msb_conv_{i}_b"],
                    stride=stride)
        h = h[:, :, :, : cfg["length_set"][i]]
        scales.append(h)
    return scales


def graph_construct(rp, cfg):
    # TODO(synk): graph_constructor_dynamic source unavailable; MTGNN/MAGNN
    # style construction per layer with scale_set modulating the (hoisted)
    # embedding projections.  Tiny (N=8, nd=8) matmuls stay in XLA.
    alpha = cfg["tanhalpha"]
    m1, m2 = rp["gc_m1"], rp["gc_m2"]
    adjs = []
    for i in range(cfg["layers"]):
        s = cfg["scale_set"][i]
        n1 = jnp.tanh(alpha * s * m1)
        n2 = jnp.tanh(alpha * s * m2)
        a = n1 @ n2.T - n2 @ n1.T
        adj = jnp.maximum(jnp.tanh(alpha * a), 0.0)
        k = cfg["subgraph_size"]
        kth = jax.lax.top_k(adj, k)[0][:, k - 1:k]
        mask = (adj >= kth).astype(adj.dtype)
        adjs.append(adj * mask)
    return adjs


def hyper_construct(rp, cfg, scales):
    # TODO(synk): multi_Hypergraph_construction source unavailable; soft (N,K)
    # incidence per layer from pooled scale features vs hyperedge embeddings.
    HEs = []
    for i, s in enumerate(scales):
        feat = jnp.mean(s.astype(jnp.float32), axis=(0, 3)).T      # (N, C)
        nemb = jnp.tanh(feat @ rp[f"hc_node_{i}"])
        logits = nemb @ rp[f"hc_edge_{i}"].T                       # (N, K)
        HEs.append(jax.nn.softmax(logits, axis=-1))
    return HEs


def mixprop_feats(x, adj, gdep, alpha):
    """mixprop WITHOUT the final 1x1 mlp (that matmul is fused per layer)."""
    N = adj.shape[0]
    adj = adj + jnp.eye(N, dtype=adj.dtype)
    a = (adj / jnp.sum(adj, axis=1, keepdims=True)).astype(x.dtype)
    h = x
    outs = [h]
    for _ in range(gdep):
        # 8-wide node contraction: far too small for the MXU path -> XLA.
        h = alpha * x + (1.0 - alpha) * jnp.einsum('vw,bcwt->bcvt', a, h)
        outs.append(h)
    return jnp.concatenate(outs, axis=1)          # (B, (gdep+1)*cc, N, T)


def hyper_propagate(x, HE):
    # TODO(synk): HypergraphLearing source unavailable; node->edge->node
    # message passing with degree normalisation (its 1x1 conv is fused later).
    He = (HE / (jnp.sum(HE, axis=0, keepdims=True) + 1e-6)).astype(x.dtype)
    Hn = (HE / (jnp.sum(HE, axis=1, keepdims=True) + 1e-6)).astype(x.dtype)
    edge = jnp.einsum('nk,bcnt->bckt', He, x)     # tiny contraction -> XLA
    node = jnp.einsum('nk,bckt->bcnt', Hn, edge)
    return node


def gated_fusion(rp, out0, out1):
    # TODO(synk): gated_fusion source unavailable; squeeze-excite style gate.
    B = out0.shape[0]
    se = jnp.mean(out0.astype(jnp.float32), axis=2).reshape(B, -1)
    se = jnp.maximum(se @ rp["gf_W1"], 0.0)                        # tiny -> XLA
    se = jax.nn.sigmoid(se @ rp["gf_W2"])                          # (B, L+1)
    w = se[:, :, None, None, None]
    return jnp.mean(out1.astype(jnp.float32) * w, axis=1)          # (B,sc,N,1)


# ----------------------------------------------------------------------------
# MSG forward.
# ----------------------------------------------------------------------------
def msg_forward(rp, cfg, x):
    B, Cin, N, T = x.shape
    assert T == cfg["seq_length"], "input sequence length mismatch"
    x = x.astype(jnp.bfloat16)                    # single cast at model entry

    scales = multi_scale_block(rp, cfg, x)
    adjs = graph_construct(rp, cfg)
    HEs = hyper_construct(rp, cfg, scales)

    # scale0 (dropout is identity in eval mode)
    out = [conv1xk(x, rp["scale0_W"], rp["scale0_b"])]
    for i in range(cfg["layers"]):
        ho1 = mixprop_feats(scales[i], adjs[i],
                            cfg["gcn_depth"], cfg["propalpha"])
        ho2 = mixprop_feats(scales[i], adjs[i].T,
                            cfg["gcn_depth"], cfg["propalpha"])
        node = hyper_propagate(scales[i], HEs[i])
        # 0.6*(gconv1+gconv2) + 0.4*hyper == one matmul with concatenated
        # inputs and pre-scaled concatenated weights (exact up to reassoc).
        Z = jnp.concatenate([ho1, ho2, node], axis=1)
        output = conv1xk(Z, rp[f"fused_{i}_W"], rp[f"fused_{i}_b"])
        out.append(conv1xk(output, rp[f"scale_conv_{i}_W"],
                           rp[f"scale_conv_{i}_b"]))

    out0 = jnp.concatenate(out, axis=1)           # (B,(L+1)*sc,N,1)
    out1 = jnp.stack(out, axis=1)                 # (B,L+1,sc,N,1)
    fused = gated_fusion(rp, out0, out1)          # single_step=True path

    h = jnp.maximum(fused, 0.0).astype(jnp.bfloat16)
    h = conv1xk(h, rp["end1_W"], rp["end1_b"], act="relu")
    y = conv1xk(h, rp["end2_W"], rp["end2_b"])
    return y.astype(jnp.float32)


# ----------------------------------------------------------------------------
# Parameter init (PyTorch-style shapes) + one-time runtime prep (reshape to
# matmul form, bf16 cast, per-layer weight fusion, hoisted graph projections).
# ----------------------------------------------------------------------------
def init_params(cfg, key):
    p = {}
    cnt = [0]

    def rnd(shape, scale=0.1):
        cnt[0] += 1
        return scale * jax.random.normal(jax.random.fold_in(key, cnt[0]),
                                         shape, jnp.float32)

    L, cc = cfg["layers"], cfg["conv_channels"]
    gc_, sc = cfg["gnn_channels"], cfg["scale_channels"]
    ec, nd = cfg["end_channels"], cfg["node_dim"]
    N, K = cfg["num_nodes"], cfg["K"]

    p["scale0_W"] = rnd((sc, cfg["in_dim"], 1, cfg["seq_length"]))
    p["scale0_b"] = rnd((sc,))
    p["msb_start_W"] = rnd((cc, cfg["in_dim"], 1, 1))
    p["msb_start_b"] = rnd((cc,))
    for i in range(L):
        p[f"msb_conv_{i}_W"] = rnd((cc, cc, 1, cfg["kernel_set"][i]))
        p[f"msb_conv_{i}_b"] = rnd((cc,))
        p[f"gconv1_{i}_W"] = rnd((gc_, (cfg["gcn_depth"] + 1) * cc, 1, 1))
        p[f"gconv1_{i}_b"] = rnd((gc_,))
        p[f"gconv2_{i}_W"] = rnd((gc_, (cfg["gcn_depth"] + 1) * cc, 1, 1))
        p[f"gconv2_{i}_b"] = rnd((gc_,))
        p[f"hl_{i}_W"] = rnd((gc_, cc, 1, 1))
        p[f"hl_{i}_b"] = rnd((gc_,))
        p[f"scale_conv_{i}_W"] = rnd((sc, cc, 1, cfg["length_set"][i]))
        p[f"scale_conv_{i}_b"] = rnd((sc,))
        p[f"hc_node_{i}"] = rnd((cc, nd))
        p[f"hc_edge_{i}"] = rnd((K, nd))
    p["gc_emb1"] = rnd((N, nd))
    p["gc_emb2"] = rnd((N, nd))
    p["gc_lin1"] = rnd((nd, nd))
    p["gc_lin2"] = rnd((nd, nd))
    p["gf_W1"] = rnd(((L + 1) * sc, L + 1))
    p["gf_W2"] = rnd((L + 1, L + 1))
    p["end1_W"] = rnd((ec, sc, 1, 1))
    p["end1_b"] = rnd((ec,))
    p["end2_W"] = rnd((cfg["out_dim"], ec, 1, 1))
    p["end2_b"] = rnd((cfg["out_dim"],))
    return p


def prepare_params(params, cfg):
    """One-time conversion to runtime form: (Cout, Cin*k) bf16 weights,
    (Cout,1) f32 biases, fused per-layer gconv/hyper weights, hoisted
    graph-construct projections."""
    rp = {}

    def wmat(W):
        return W.reshape(W.shape[0], -1).astype(jnp.bfloat16)

    def bcol(b):
        return b.reshape(-1, 1).astype(jnp.float32)

    rp["scale0_W"], rp["scale0_b"] = wmat(params["scale0_W"]), bcol(params["scale0_b"])
    rp["msb_start_W"], rp["msb_start_b"] = (wmat(params["msb_start_W"]),
                                            bcol(params["msb_start_b"]))
    for i in range(cfg["layers"]):
        rp[f"msb_conv_{i}_W"] = wmat(params[f"msb_conv_{i}_W"])
        rp[f"msb_conv_{i}_b"] = bcol(params[f"msb_conv_{i}_b"])
        W1 = params[f"gconv1_{i}_W"].reshape(params[f"gconv1_{i}_W"].shape[0], -1)
        W2 = params[f"gconv2_{i}_W"].reshape(params[f"gconv2_{i}_W"].shape[0], -1)
        Wh = params[f"hl_{i}_W"].reshape(params[f"hl_{i}_W"].shape[0], -1)
        rp[f"fused_{i}_W"] = jnp.concatenate(
            [0.6 * W1, 0.6 * W2, 0.4 * Wh], axis=1).astype(jnp.bfloat16)
        rp[f"fused_{i}_b"] = bcol(
            0.6 * (params[f"gconv1_{i}_b"] + params[f"gconv2_{i}_b"])
            + 0.4 * params[f"hl_{i}_b"])
        rp[f"scale_conv_{i}_W"] = wmat(params[f"scale_conv_{i}_W"])
        rp[f"scale_conv_{i}_b"] = bcol(params[f"scale_conv_{i}_b"])
        rp[f"hc_node_{i}"] = params[f"hc_node_{i}"]
        rp[f"hc_edge_{i}"] = params[f"hc_edge_{i}"]
    # loop-invariant graph-construct projections, hoisted once
    rp["gc_m1"] = params["gc_emb1"] @ params["gc_lin1"]
    rp["gc_m2"] = params["gc_emb2"] @ params["gc_lin2"]
    rp["gf_W1"], rp["gf_W2"] = params["gf_W1"], params["gf_W2"]
    rp["end1_W"], rp["end1_b"] = wmat(params["end1_W"]), bcol(params["end1_b"])
    rp["end2_W"], rp["end2_b"] = wmat(params["end2_W"]), bcol(params["end2_b"])
    return rp


if __name__ == "__main__":
    cfg = dict(
        gcn_depth=2, K=4, num_nodes=8, subgraph_size=4, node_dim=8,
        conv_channels=16, gnn_channels=16, scale_channels=8, end_channels=32,
        seq_length=32, in_dim=1, out_dim=12, layers=3,
        propalpha=0.05, tanhalpha=3.0, single_step=True,
    )
    cfg["kernel_set"] = [7, 6, 3, 2]          # single_step=True kernel set
    cfg["scale_set"] = [1, 0.8, 0.6, 0.5]
    length_set = [cfg["seq_length"] - cfg["kernel_set"][0] + 1]
    for i in range(1, cfg["layers"]):
        length_set.append(int((length_set[i - 1] - cfg["kernel_set"][i]) / 2))
    cfg["length_set"] = length_set            # [26, 10, 3] for seq_length=32

    key = jax.random.PRNGKey(0)
    kx, kp = jax.random.split(key)
    x = jax.random.normal(
        kx, (2, cfg["in_dim"], cfg["num_nodes"], cfg["seq_length"]), jnp.float32)
    params = init_params(cfg, kp)
    rparams = prepare_params(params, cfg)     # one-time reshape/cast/fusion

    fwd = jax.jit(lambda p, xx: msg_forward(p, cfg, xx))
    y = jax.block_until_ready(fwd(rparams, x))
    assert y.shape == (2, cfg["out_dim"], cfg["num_nodes"], 1), y.shape
    print("KERNEL_OK")
</pallas_src>

<mosaic_0001>
module attributes {stable_mosaic.version = 11 : i64} {
  func.func @_bmm_kernel(%arg0: i32, %arg1: memref<16x112xbf16, #tpu.memory_space<vmem>>, %arg2: memref<1x112x208xbf16, #tpu.memory_space<vmem>>, %arg3: memref<16x1xf32, #tpu.memory_space<vmem>>, %arg4: memref<1x16x208xbf16, #tpu.memory_space<vmem>>) attributes {dimension_semantics = [#tpu.dimension_semantics<parallel>], iteration_bounds = array<i64: 2>, scalar_prefetch = 0 : i64, scratch_operands = 0 : i64, tpu.core_type = #tpu.core_type<tc>, window_params = [{pipeline_mode = #tpu.pipeline_mode<synchronous>, transform_indices = @transform_0, window_bounds = array<i64: 16, 112>}, {transform_indices = @transform_1, window_bounds = array<i64: 1, 112, 208>}, {pipeline_mode = #tpu.pipeline_mode<synchronous>, transform_indices = @transform_2, window_bounds = array<i64: 16, 1>}, {transform_indices = @transform_3, window_bounds = array<i64: 1, 16, 208>}]} {
    %c0 = arith.constant 0 : index
    %c0_0 = arith.constant 0 : index
    %0 = vector.load %arg1[%c0, %c0_0] : memref<16x112xbf16, #tpu.memory_space<vmem>>, vector<16x112xbf16>
    %c0_1 = arith.constant 0 : index
    %c0_2 = arith.constant 0 : index
    %c0_3 = arith.constant 0 : index
    %1 = vector.load %arg2[%c0_1, %c0_2, %c0_3] : memref<1x112x208xbf16, #tpu.memory_space<vmem>>, vector<1x112x208xbf16>
    %2 = vector.shape_cast %1 : vector<1x112x208xbf16> to vector<112x208xbf16>
    %cst = arith.constant dense<0.000000e+00> : vector<16x208xf32>
    %3 = tpu.matmul %0, %2, %cst {dimension_numbers = #tpu.dot_dimension_numbers<[1], [0], [0], [1], [0, 0, 1, 1], [], []>} : vector<16x112xbf16>, vector<112x208xbf16>, vector<16x208xf32> -> vector<16x208xf32>
    %c0_4 = arith.constant 0 : index
    %c0_5 = arith.constant 0 : index
    %4 = vector.load %arg3[%c0_4, %c0_5] : memref<16x1xf32, #tpu.memory_space<vmem>>, vector<16x1xf32>
    %5 = vector.broadcast %4 : vector<16x1xf32> to vector<16x208xf32>
    %6 = arith.addf %3, %5 : vector<16x208xf32>
    %7 = arith.truncf %6 : vector<16x208xf32> to vector<16x208xbf16>
    %c0_6 = arith.constant 0 : index
    %c0_7 = arith.constant 0 : index
    %c0_8 = arith.constant 0 : index
    %8 = vector.load %arg4[%c0_6, %c0_7, %c0_8] : memref<1x16x208xbf16, #tpu.memory_space<vmem>>, vector<1x16x208xbf16>
    %9 = vector.shape_cast %8 : vector<1x16x208xbf16> to vector<16x208xbf16>
    %10 = vector.shape_cast %7 : vector<16x208xbf16> to vector<1x16x208xbf16>
    tpu.vector_store %arg4[%c0_6, %c0_7, %c0_8], %10 {strides = array<i32>} : memref<1x16x208xbf16, #tpu.memory_space<vmem>>, vector<1x16x208xbf16>,
    return
  }
  func.func @transform_0(%arg0: i32) -> (i32, i32) {
    %c0_i32 = arith.constant 0 : i32
    %c0_i32_0 = arith.constant 0 : i32
    %c0_i32_1 = arith.constant 0 : i32
    return %c0_i32, %c0_i32_0 : i32, i32
  }
  func.func @transform_1(%arg0: i32) -> (i32, i32, i32) {
    %c0_i32 = arith.constant 0 : i32
    %c0_i32_0 = arith.constant 0 : i32
    %c0_i32_1 = arith.constant 0 : i32
    return %arg0, %c0_i32, %c0_i32_0 : i32, i32, i32
  }
  func.func @transform_2(%arg0: i32) -> (i32, i32) {
    %c0_i32 = arith.constant 0 : i32
    %c0_i32_0 = arith.constant 0 : i32
    %c0_i32_1 = arith.constant 0 : i32
    return %c0_i32, %c0_i32_0 : i32, i32
  }
  func.func @transform_3(%arg0: i32) -> (i32, i32, i32) {
    %c0_i32 = arith.constant 0 : i32
    %c0_i32_0 = arith.constant 0 : i32
    %c0_i32_1 = arith.constant 0 : i32
    return %arg0, %c0_i32, %c0_i32_0 : i32, i32, i32
  }
}

module attributes {stable_mosaic.version = 11 : i64} {
  func.func @_bmm_kernel(%arg0: i32, %arg1: memref<16x96xbf16, #tpu.memory_space<vmem>>, %arg2: memref<1x96x88xbf16, #tpu.memory_space<vmem>>, %arg3: memref<16x1xf32, #tpu.memory_space<vmem>>, %arg4: memref<1x16x88xbf16, #tpu.memory_space<vmem>>) attributes {dimension_semantics = [#tpu.dimension_semantics<parallel>], iteration_bounds = array<i64: 2>, scalar_prefetch = 0 : i64, scratch_operands = 0 : i64, tpu.core_type = #tpu.core_type<tc>, window_params = [{pipeline_mode = #tpu.pipeline_mode<synchronous>, transform_indices = @transform_0, window_bounds = array<i64: 16, 96>}, {transform_indices = @transform_1, window_bounds = array<i64: 1, 96, 88>}, {pipeline_mode = #tpu.pipeline_mode<synchronous>, transform_indices = @transform_2, window_bounds = array<i64: 16, 1>}, {transform_indices = @transform_3, window_bounds = array<i64: 1, 16, 88>}]} {
    %c0 = arith.constant 0 : index
    %c0_0 = arith.constant 0 : index
    %0 = vector.load %arg1[%c0, %c0_0] : memref<16x96xbf16, #tpu.memory_space<vmem>>, vector<16x96xbf16>
    %c0_1 = arith.constant 0 : index
    %c0_2 = arith.constant 0 : index
    %c0_3 = arith.constant 0 : index
    %1 = vector.load %arg2[%c0_1, %c0_2, %c0_3] : memref<1x96x88xbf16, #tpu.memory_space<vmem>>, vector<1x96x88xbf16>
    %2 = vector.shape_cast %1 : vector<1x96x88xbf16> to vector<96x88xbf16>
    %cst = arith.constant dense<0.000000e+00> : vector<16x88xf32>
    %3 = tpu.matmul %0, %2, %cst {dimension_numbers = #tpu.dot_dimension_numbers<[1], [0], [0], [1], [0, 0, 1, 1], [], []>} : vector<16x96xbf16>, vector<96x88xbf16>, vector<16x88xf32> -> vector<16x88xf32>
    %c0_4 = arith.constant 0 : index
    %c0_5 = arith.constant 0 : index
    %4 = vector.load %arg3[%c0_4, %c0_5] : memref<16x1xf32, #tpu.memory_space<vmem>>, vector<16x1xf32>
    %5 = vector.broadcast %4 : vector<16x1xf32> to vector<16x88xf32>
    %6 = arith.addf %3, %5 : vector<16x88xf32>
    %7 = arith.truncf %6 : vector<16x88xf32> to vector<16x88xbf16>
    %c0_6 = arith.constant 0 : index
    %c0_7 = arith.constant 0 : index
    %c0_8 = arith.constant 0 : index
    %8 = vector.load %arg4[%c0_6, %c0_7, %c0_8] : memref<1x16x88xbf16, #tpu.memory_space<vmem>>, vector<1x16x88xbf16>
    %9 = vector.shape_cast %8 : vector<1x16x88xbf16> to vector<16x88xbf16>
    %10 = vector.shape_cast %7 : vector<16x88xbf16> to vector<1x16x88xbf16>
    tpu.vector_store %arg4[%c0_6, %c0_7, %c0_8], %10 {strides = array<i32>} : memref<1x16x88xbf16, #tpu.memory_space<vmem>>, vector<1x16x88xbf16>,
    return
  }
  func.func @transform_0(%arg0: i32) -> (i32, i32) {
    %c0_i32 = arith.constant 0 : i32
    %c0_i32_0 = arith.constant 0 : i32
    %c0_i32_1 = arith.constant 0 : i32
    return %c0_i32, %c0_i32_0 : i32, i32
  }
  func.func @transform_1(%arg0: i32) -> (i32, i32, i32) {
    %c0_i32 = arith.constant 0 : i32
    %c0_i32_0 = arith.constant 0 : i32
    %c0_i32_1 = arith.constant 0 : i32
    return %arg0, %c0_i32, %c0_i32_0 : i32, i32, i32
  }
  func.func @transform_2(%arg0: i32) -> (i32, i32) {
    %c0_i32 = arith.constant 0 : i32
    %c0_i32_0 = arith.constant 0 : i32
    %c0_i32_1 = arith.constant 0 : i32
    return %c0_i32, %c0_i32_0 : i32, i32
  }
  func.func @transform_3(%arg0: i32) -> (i32, i32, i32) {
    %c0_i32 = arith.constant 0 : i32
    %c0_i32_0 = arith.constant 0 : i32
    %c0_i32_1 = arith.constant 0 : i32
    return %arg0, %c0_i32, %c0_i32_0 : i32, i32, i32
  }
}

module attributes {stable_mosaic.version = 11 : i64} {
  func.func @_bmm_kernel(%arg0: i32, %arg1: memref<16x112xbf16, #tpu.memory_space<vmem>>, %arg2: memref<1x112x80xbf16, #tpu.memory_space<vmem>>, %arg3: memref<16x1xf32, #tpu.memory_space<vmem>>, %arg4: memref<1x16x80xbf16, #tpu.memory_space<vmem>>) attributes {dimension_semantics = [#tpu.dimension_semantics<parallel>], iteration_bounds = array<i64: 2>, scalar_prefetch = 0 : i64, scratch_operands = 0 : i64, tpu.core_type = #tpu.core_type<tc>, window_params = [{pipeline_mode = #tpu.pipeline_mode<synchronous>, transform_indices = @transform_0, window_bounds = array<i64: 16, 112>}, {transform_indices = @transform_1, window_bounds = array<i64: 1, 112, 80>}, {pipeline_mode = #tpu.pipeline_mode<synchronous>, transform_indices = @transform_2, window_bounds = array<i64: 16, 1>}, {transform_indices = @transform_3, window_bounds = array<i64: 1, 16, 80>}]} {
    %c0 = arith.constant 0 : index
    %c0_0 = arith.constant 0 : index
    %0 = vector.load %arg1[%c0, %c0_0] : memref<16x112xbf16, #tpu.memory_space<vmem>>, vector<16x112xbf16>
    %c0_1 = arith.constant 0 : index
    %c0_2 = arith.constant 0 : index
    %c0_3 = arith.constant 0 : index
    %1 = vector.load %arg2[%c0_1, %c0_2, %c0_3] : memref<1x112x80xbf16, #tpu.memory_space<vmem>>, vector<1x112x80xbf16>
    %2 = vector.shape_cast %1 : vector<1x112x80xbf16> to vector<112x80xbf16>
    %cst = arith.constant dense<0.000000e+00> : vector<16x80xf32>
    %3 = tpu.matmul %0, %2, %cst {dimension_numbers = #tpu.dot_dimension_numbers<[1], [0], [0], [1], [0, 0, 1, 1], [], []>} : vector<16x112xbf16>, vector<112x80xbf16>, vector<16x80xf32> -> vector<16x80xf32>
    %c0_4 = arith.constant 0 : index
    %c0_5 = arith.constant 0 : index
    %4 = vector.load %arg3[%c0_4, %c0_5] : memref<16x1xf32, #tpu.memory_space<vmem>>, vector<16x1xf32>
    %5 = vector.broadcast %4 : vector<16x1xf32> to vector<16x80xf32>
    %6 = arith.addf %3, %5 : vector<16x80xf32>
    %7 = arith.truncf %6 : vector<16x80xf32> to vector<16x80xbf16>
    %c0_6 = arith.constant 0 : index
    %c0_7 = arith.constant 0 : index
    %c0_8 = arith.constant 0 : index
    %8 = vector.load %arg4[%c0_6, %c0_7, %c0_8] : memref<1x16x80xbf16, #tpu.memory_space<vmem>>, vector<1x16x80xbf16>
    %9 = vector.shape_cast %8 : vector<1x16x80xbf16> to vector<16x80xbf16>
    %10 = vector.shape_cast %7 : vector<16x80xbf16> to vector<1x16x80xbf16>
    tpu.vector_store %arg4[%c0_6, %c0_7, %c0_8], %10 {strides = array<i32>} : memref<1x16x80xbf16, #tpu.memory_space<vmem>>, vector<1x16x80xbf16>,
    return
  }
  func.func @transform_0(%arg0: i32) -> (i32, i32) {
    %c0_i32 = arith.constant 0 : i32
    %c0_i32_0 = arith.constant 0 : i32
    %c0_i32_1 = arith.constant 0 : i32
    return %c0_i32, %c0_i32_0 : i32, i32
  }
  func.func @transform_1(%arg0: i32) -> (i32, i32, i32) {
    %c0_i32 = arith.constant 0 : i32
    %c0_i32_0 = arith.constant 0 : i32
    %c0_i32_1 = arith.constant 0 : i32
    return %arg0, %c0_i32, %c0_i32_0 : i32, i32, i32
  }
  func.func @transform_2(%arg0: i32) -> (i32, i32) {
    %c0_i32 = arith.constant 0 : i32
    %c0_i32_0 = arith.constant 0 : i32
    %c0_i32_1 = arith.constant 0 : i32
    return %c0_i32, %c0_i32_0 : i32, i32
  }
  func.func @transform_3(%arg0: i32) -> (i32, i32, i32) {
    %c0_i32 = arith.constant 0 : i32
    %c0_i32_0 = arith.constant 0 : i32
    %c0_i32_1 = arith.constant 0 : i32
    return %arg0, %c0_i32, %c0_i32_0 : i32, i32, i32
  }
}

</mosaic_0001>

<bundles_post_ra>
// kernel: _lambda_.4
= control target key start
LH: loop header
LB: loop body
LE: loop exit
PB: predicated region body
PF: predicated region fallthrough
CT: control target
= control target key end

     0   :  { %s487_s12 = smov 0   ;;  %s517_s0 = inlined_call_operand.vmem [shape: bf16[16,112], index: 0, kind: input, shape index: {}]   ;;  %s518_s1 = inlined_call_operand.vmem [shape: bf16[2,112,208], index: 1, kind: input, shape index: {}]   ;;  %s519_s2 = inlined_call_operand.vmem [shape: f32[16,1], index: 2, kind: input, shape index: {}]   ;;  %s520_s3 = inlined_call_operand.vmem [shape: bf16[2,16,208], index: 3, kind: output, shape index: {}]  }
   0x1 LB: > { %s394_s13 = sadd.s32 4294967295, %s464_s12   ;;  %p398_p0 = scmp.ge.s32.totalorder %s464_s12, 1  ;;  %s464_s12 = sphi %s487_s12, %s13_s12  }
   0x2   : > { %p137_p1 = scmp.lt.s32.totalorder %s464_s12, 3 }
   0x4   : > { %p138_p2 = pnand %p398_p0, %p137_p1 }
   0x5   : > { %p161_p3 = scmp.lt.s32.totalorder (!%p138_p2), %s394_s13, 1  ;;  %v466_v0 = vmov (!%p138_p2), 0   ;;  %v188_v1 = vld [vmem:[%s519_s2] sm:$0xff] (!%p138_p2)  ;;  %v189_v2 = vld [vmem:[%s519_s2 + $0x8] sm:$0xff] (!%p138_p2)  ;;  %vm275_vm0 = vcmask (!%p138_p2), 916480   ;;  %vm334_vm1 = vcmask (!%p138_p2), 1043456  }
   0x6   : > { %141 = sbr.rel (%p138_p2) target bundleno = 266 (0x10a), region = 32  ;;  %311 = vmatprep.mubr.bf16.mxu0 (!%p138_p2), %v466_v0  ;;  %435 = vset.pattern.permute.xlu0 (!%p138_p2), %v466_v0  ;;  %v457_v17 = vld [vmem:[%s517_s0] sm:$0xff] (!%p138_p2)   ;;  %vm335_vm2 = vcmask (!%p138_p2), 654340  }
   0x7   : > { %192 = vperm.xlu0 (!%p138_p2), %435, %v188_v1   ;;  %vm336_vm3 = vmor (!%p138_p2), %vm335_vm2, %vm334_vm1 }
   0xb   : > { %197 = vperm.xlu0 (!%p138_p2), %435, %v189_v2  }
   0xd   : > { %s522_s13 = smov (!%p161_p3, %s394_s13), 1 }
   0xe   : > { %s425_s18 = smul.u32 112, %s522_s13  ;;  %s422_s24 = sshll.u32 %s522_s13, 4 }
   0xf   : > { %s170_s27 = scalar_lea.vmem %s520_s3, %s422_s24 }
  0x10   : > { %s165_s21 = scalar_lea.vmem %s518_s1, %s425_s18 }
  0x11   : > { %v436_v3 = vld [vmem:[%s165_s21 + $0x4] ss:$8 sps:$4 sm:$0xff]   ;;  %v438_v4 = vld [vmem:[%s165_s21] ss:$8 sps:$4 sm:$0xff]   ;;  %v439_v5 = vld [vmem:[%s165_s21 + $0x14] ss:$8 sps:$4 sm:$0xff]  }
  0x12   : > { %279 = vmatprep.subr.bf16.mxu0 %v436_v3  ;;  %v441_v6 = vld [vmem:[%s165_s21 + $0x10] ss:$8 sps:$4 sm:$0xff]   ;;  %v442_v7 = vld [vmem:[%s165_s21 + $0x24] ss:$8 sps:$4 sm:$0xff]   ;;  %v444_v8 = vld [vmem:[%s165_s21 + $0x20] ss:$8 sps:$4 sm:$0xff]  }
  0x13   : > { %280 = vmatpush1.bf16.msra.mxu0 %v438_v4  ;;  %v445_v9 = vld [vmem:[%s165_s21 + $0x34] ss:$8 sps:$4 sm:$0xff]   ;;  %v447_v10 = vld [vmem:[%s165_s21 + $0x30] ss:$8 sps:$4 sm:$0xff]   ;;  %v448_v11 = vld [vmem:[%s165_s21 + $0x44] ss:$8 sps:$4 sm:$0xff]  }
  0x14   : > { %281 = vmatprep.subr.bf16.mxu0 %v439_v5  ;;  %v450_v12 = vld [vmem:[%s165_s21 + $0x40] ss:$8 sps:$4 sm:$0xff]   ;;  %v451_v13 = vld [vmem:[%s165_s21 + $0x54] ss:$8 sps:$4 sm:$0xff]   ;;  %v453_v14 = vld [vmem:[%s165_s21 + $0x50] ss:$8 sps:$4 sm:$0xff]  }
  0x15   : > { %v454_v15 = vld [vmem:[%s165_s21 + $0x64] ss:$8 sps:$4 sm:$0xff]   ;;  %v456_v16 = vld [vmem:[%s165_s21 + $0x60] ss:$8 sps:$4 sm:$0xff]  }
  0x17   : > { %282 = vmatpush1.bf16.msra.mxu0 %v441_v6 }
  0x18   : > { %283 = vmatprep.subr.bf16.mxu0 %v442_v7 }
  0x1b   : > { %284 = vmatpush1.bf16.msra.mxu0 %v444_v8 }
  0x1c   : > { %285 = vmatprep.subr.bf16.mxu0 %v445_v9 }
  0x1f   : > { %286 = vmatpush1.bf16.msra.mxu0 %v447_v10 }
  0x20   : > { %287 = vmatprep.subr.bf16.mxu0 %v448_v11 }
  0x23   : > { %288 = vmatpush1.bf16.msra.mxu0 %v450_v12 }
  0x24   : > { %289 = vmatprep.subr.bf16.mxu0 %v451_v13 }
  0x27   : > { %290 = vmatpush1.bf16.msra.mxu0 %v453_v14 }
  0x28   : > { %291 = vmatprep.subr.bf16.mxu0 %v454_v15 }
  0x2b   : > { %292 = vmatpush1.bf16.msra.mxu0 %v456_v16 }
  0x2e   : > { %417 = vmatmul.mubr.msk.bf16.vlgmr.msra.gmra.mrb[0].mxu0 %vm275_vm0, %v457_v17 }
  0x86   : > { %v193_v18 = vpop.permute.xlu0 %192 }
  0x8a   : > { %v198_v22 = vpop.permute.xlu0 %197 }
 0x101   : > { %v313_v19 = vpop.f32.mrb[0].mxu0 }
 0x102   : > { %v314_v20 = vadd.f32 %v313_v19, %v193_v18  ;;  %v315_v21 = vpop.f32.mrb[1].mxu0 }
 0x103   : > { %v316_v23 = vadd.f32 %v315_v21, %v193_v18  ;;  %v317_v24 = vpop.f32.mrb[2].mxu0 }
 0x104   : > { %v318_v25 = vadd.f32 %v317_v24, %v198_v22  ;;  %v319_v26 = vpop.f32.mrb[3].mxu0 }
 0x105   : > { %v423_v27 = vpack.c.bf16 %v316_v23, %v314_v20  ;;  %v320_v28 = vadd.f32 %v319_v26, %v198_v22 }
 0x107   : > { %337 = vst.msk [vmem:[%s170_s27] sm:$0xff] %vm336_vm3, %v423_v27  ;;  %v424_v29 = vpack.c.bf16 %v320_v28, %v318_v25 }
 0x109   : > { %338 = vst.msk [vmem:[%s170_s27 + $0x8] sm:$0xff] %vm336_vm3, %v424_v29 }
 0x10a PF: > { %s13_s12 = sadd.s32 1, %s464_s12  }
 0x10b   : > { %p10_p4 = scmp.ge.s32.totalorder %s13_s12, 4  }
 0x10d   :  { %12 = sbr.rel (!%p10_p4) target bundleno = 1 (0x1), region = 62 }

// kernel: _lambda_.5
= control target key start
LH: loop header
LB: loop body
LE: loop exit
PB: predicated region body
PF: predicated region fallthrough
CT: control target
= control target key end

     0   :  { %s447_s12 = smov 0   ;;  %s477_s0 = inlined_call_operand.vmem [shape: bf16[16,96], index: 0, kind: input, shape index: {}]   ;;  %s478_s1 = inlined_call_operand.vmem [shape: bf16[2,96,88], index: 1, kind: input, shape index: {}]   ;;  %s479_s2 = inlined_call_operand.vmem [shape: f32[16,1], index: 2, kind: input, shape index: {}]   ;;  %s480_s3 = inlined_call_operand.vmem [shape: bf16[2,16,88], index: 3, kind: output, shape index: {}]  }
   0x1 LB: > { %s350_s13 = sadd.s32 4294967295, %s422_s12   ;;  %p354_p0 = scmp.ge.s32.totalorder %s422_s12, 1  ;;  %s422_s12 = sphi %s447_s12, %s13_s12  }
   0x2   : > { %p137_p1 = scmp.lt.s32.totalorder %s422_s12, 3 }
   0x4   : > { %p138_p2 = pnand %p354_p0, %p137_p1 }
   0x5   : > { %p161_p3 = scmp.lt.s32.totalorder (!%p138_p2), %s350_s13, 1  ;;  %v424_v0 = vmov (!%p138_p2), 0.0   ;;  %vm425_vm0 = vmmov (!%p138_p2), 0   ;;  %v186_v1 = vld [vmem:[%s479_s2] sm:$0xff] (!%p138_p2)  ;;  %v426_v2 = vmov (!%p138_p2), 0   ;;  %v187_v3 = vld [vmem:[%s479_s2 + $0x8] sm:$0xff] (!%p138_p2) }
   0x6   : > { %141 = sbr.rel (%p138_p2) target bundleno = 260 (0x104), region = 32  ;;  %380 = vmatprep.subr.bf16.mxu0 (!%p138_p2), %v424_v0  ;;  %392 = vmatprep.mubr.msk.bf16.mxu0 (!%p138_p2), %vm425_vm0, %v424_v0  ;;  %v415_v10 = vld [vmem:[%s477_s0] sm:$0xff] (!%p138_p2)   ;;  %vm239_vm1 = vcmask (!%p138_p2), 785408   ;;  %vm292_vm2 = vcmask (!%p138_p2), 715776  }
   0x7   : > { %408 = vset.pattern.permute.xlu0 (!%p138_p2), %v426_v2 }
   0x8   : > { %190 = vperm.xlu0 (!%p138_p2), %408, %v186_v1  }
   0xc   : > { %195 = vperm.xlu0 (!%p138_p2), %408, %v187_v3  }
   0xd   : > { %s482_s13 = smov (!%p161_p3, %s350_s13), 1 }
   0xe   : > { %s396_s16 = smul.u32 48, %s482_s13  ;;  %s370_s24 = sshll.u32 %s482_s13, 3 }
   0xf   : > { %s170_s27 = scalar_lea.vmem %s480_s3, %s370_s24 }
  0x10   : > { %s165_s21 = scalar_lea.vmem %s478_s1, %s396_s16 }
  0x11   : > { %v409_v4 = vld [vmem:[%s165_s21] sm:$0xff]   ;;  %v410_v5 = vld [vmem:[%s165_s21 + $0x8] sm:$0xff]   ;;  %v411_v6 = vld [vmem:[%s165_s21 + $0x10] sm:$0xff]  }
  0x12   : > { %381 = vmatpush3.bf16.msra.mxu0 %v409_v4  ;;  %v412_v7 = vld [vmem:[%s165_s21 + $0x18] sm:$0xff]   ;;  %v413_v8 = vld [vmem:[%s165_s21 + $0x20] sm:$0xff]   ;;  %v414_v9 = vld [vmem:[%s165_s21 + $0x28] sm:$0xff]  }
  0x13   : > { %382 = vmatprep.subr.bf16.mxu0 %v424_v0 }
  0x16   : > { %383 = vmatpush3.bf16.msra.mxu0 %v410_v5 }
  0x17   : > { %384 = vmatprep.subr.bf16.mxu0 %v424_v0 }
  0x1a   : > { %385 = vmatpush3.bf16.msra.mxu0 %v411_v6 }
  0x1b   : > { %386 = vmatprep.subr.bf16.mxu0 %v424_v0 }
  0x1e   : > { %387 = vmatpush3.bf16.msra.mxu0 %v412_v7 }
  0x1f   : > { %388 = vmatprep.subr.bf16.mxu0 %v424_v0 }
  0x22   : > { %389 = vmatpush3.bf16.msra.mxu0 %v413_v8 }
  0x23   : > { %390 = vmatprep.subr.bf16.mxu0 %v424_v0 }
  0x26   : > { %391 = vmatpush3.bf16.msra.mxu0 %v414_v9 }
  0x29   : > { %393 = vmatmul.mubr.msk.bf16.vlgmr.msra.gmra.mrb[0].mxu0 %vm239_vm1, %v415_v10 }
  0x87   : > { %v191_v11 = vpop.permute.xlu0 %190 }
  0x8b   : > { %v196_v15 = vpop.permute.xlu0 %195 }
  0xfc   : > { %v277_v12 = vpop.f32.mrb[0].mxu0 }
  0xfd   : > { %v278_v13 = vadd.f32 %v277_v12, %v191_v11  ;;  %v394_v14 = vpop.f32.mrb[1].mxu0 }
  0xfe   : > { %v280_v16 = vpop.f32.mrb[2].mxu0 }
  0xff   : > { %v371_v17 = vpack.c.bf16 %v278_v13, %v278_v13  ;;  %v281_v18 = vadd.f32 %v280_v16, %v196_v15  ;;  %v395_v19 = vpop.f32.mrb[3].mxu0 }
 0x101   : > { %293 = vst.msk [vmem:[%s170_s27] sm:$0xf] %vm292_vm2, %v371_v17  ;;  %v372_v20 = vpack.c.bf16 %v281_v18, %v281_v18 }
 0x103   : > { %294 = vst.msk [vmem:[%s170_s27 + $0x4] sm:$0xf] %vm292_vm2, %v372_v20 }
 0x104 PF: > { %s13_s12 = sadd.s32 1, %s422_s12  }
 0x105   : > { %p10_p4 = scmp.ge.s32.totalorder %s13_s12, 4  }
 0x107   :  { %12 = sbr.rel (!%p10_p4) target bundleno = 1 (0x1), region = 62 }

// kernel: _lambda_.7
= control target key start
LH: loop header
LB: loop body
LE: loop exit
PB: predicated region body
PF: predicated region fallthrough
CT: control target
= control target key end

     0   :  { %s460_s12 = smov 0   ;;  %s490_s0 = inlined_call_operand.vmem [shape: bf16[16,112], index: 0, kind: input, shape index: {}]   ;;  %s491_s1 = inlined_call_operand.vmem [shape: bf16[2,112,80], index: 1, kind: input, shape index: {}]   ;;  %s492_s2 = inlined_call_operand.vmem [shape: f32[16,1], index: 2, kind: input, shape index: {}]   ;;  %s493_s3 = inlined_call_operand.vmem [shape: bf16[2,16,80], index: 3, kind: output, shape index: {}]  }
   0x1 LB: > { %s358_s13 = sadd.s32 4294967295, %s435_s12   ;;  %p362_p0 = scmp.ge.s32.totalorder %s435_s12, 1  ;;  %s435_s12 = sphi %s460_s12, %s13_s12  }
   0x2   : > { %p137_p1 = scmp.lt.s32.totalorder %s435_s12, 3 }
   0x4   : > { %p138_p2 = pnand %p362_p0, %p137_p1 }
   0x5   : > { %p161_p3 = scmp.lt.s32.totalorder (!%p138_p2), %s358_s13, 1  ;;  %v437_v0 = vmov (!%p138_p2), 0.0   ;;  %vm438_vm0 = vmmov (!%p138_p2), 0   ;;  %v188_v1 = vld [vmem:[%s492_s2] sm:$0xff] (!%p138_p2)  ;;  %v439_v2 = vmov (!%p138_p2), 0   ;;  %v189_v3 = vld [vmem:[%s492_s2 + $0x8] sm:$0xff] (!%p138_p2) }
   0x6   : > { %141 = sbr.rel (%p138_p2) target bundleno = 264 (0x108), region = 32  ;;  %390 = vmatprep.subr.bf16.mxu0 (!%p138_p2), %v437_v0  ;;  %404 = vmatprep.mubr.msk.bf16.mxu0 (!%p138_p2), %vm438_vm0, %v437_v0  ;;  %v428_v11 = vld [vmem:[%s490_s0] sm:$0xff] (!%p138_p2)   ;;  %vm247_vm1 = vcmask (!%p138_p2), 916480   ;;  %vm300_vm2 = vcmask (!%p138_p2), 650240  }
   0x7   : > { %420 = vset.pattern.permute.xlu0 (!%p138_p2), %v439_v2 }
   0x8   : > { %192 = vperm.xlu0 (!%p138_p2), %420, %v188_v1  }
   0xc   : > { %197 = vperm.xlu0 (!%p138_p2), %420, %v189_v3  }
   0xd   : > { %s495_s13 = smov (!%p161_p3, %s358_s13), 1 }
   0xe   : > { %s408_s16 = smul.u32 56, %s495_s13  ;;  %s379_s24 = sshll.u32 %s495_s13, 3 }
   0xf   : > { %s170_s27 = scalar_lea.vmem %s493_s3, %s379_s24 }
  0x10   : > { %s165_s21 = scalar_lea.vmem %s491_s1, %s408_s16 }
  0x11   : > { %v421_v4 = vld [vmem:[%s165_s21] sm:$0xff]   ;;  %v422_v5 = vld [vmem:[%s165_s21 + $0x8] sm:$0xff]   ;;  %v423_v6 = vld [vmem:[%s165_s21 + $0x10] sm:$0xff]  }
  0x12   : > { %391 = vmatpush3.bf16.msra.mxu0 %v421_v4  ;;  %v424_v7 = vld [vmem:[%s165_s21 + $0x18] sm:$0xff]   ;;  %v425_v8 = vld [vmem:[%s165_s21 + $0x20] sm:$0xff]   ;;  %v426_v9 = vld [vmem:[%s165_s21 + $0x28] sm:$0xff]  }
  0x13   : > { %392 = vmatprep.subr.bf16.mxu0 %v437_v0  ;;  %v427_v10 = vld [vmem:[%s165_s21 + $0x30] sm:$0xff]  }
  0x16   : > { %393 = vmatpush3.bf16.msra.mxu0 %v422_v5 }
  0x17   : > { %394 = vmatprep.subr.bf16.mxu0 %v437_v0 }
  0x1a   : > { %395 = vmatpush3.bf16.msra.mxu0 %v423_v6 }
  0x1b   : > { %396 = vmatprep.subr.bf16.mxu0 %v437_v0 }
  0x1e   : > { %397 = vmatpush3.bf16.msra.mxu0 %v424_v7 }
  0x1f   : > { %398 = vmatprep.subr.bf16.mxu0 %v437_v0 }
  0x22   : > { %399 = vmatpush3.bf16.msra.mxu0 %v425_v8 }
  0x23   : > { %400 = vmatprep.subr.bf16.mxu0 %v437_v0 }
  0x26   : > { %401 = vmatpush3.bf16.msra.mxu0 %v426_v9 }
  0x27   : > { %402 = vmatprep.subr.bf16.mxu0 %v437_v0 }
  0x2a   : > { %403 = vmatpush3.bf16.msra.mxu0 %v427_v10 }
  0x2d   : > { %405 = vmatmul.mubr.msk.bf16.vlgmr.msra.gmra.mrb[0].mxu0 %vm247_vm1, %v428_v11 }
  0x87   : > { %v193_v12 = vpop.permute.xlu0 %192 }
  0x8b   : > { %v198_v16 = vpop.permute.xlu0 %197 }
 0x100   : > { %v285_v13 = vpop.f32.mrb[0].mxu0 }
 0x101   : > { %v286_v14 = vadd.f32 %v285_v13, %v193_v12  ;;  %v406_v15 = vpop.f32.mrb[1].mxu0 }
 0x102   : > { %v288_v17 = vpop.f32.mrb[2].mxu0 }
 0x103   : > { %v380_v18 = vpack.c.bf16 %v286_v14, %v286_v14  ;;  %v289_v19 = vadd.f32 %v288_v17, %v198_v16  ;;  %v407_v20 = vpop.f32.mrb[3].mxu0 }
 0x105   : > { %301 = vst.msk [vmem:[%s170_s27] sm:$0xf] %vm300_vm2, %v380_v18  ;;  %v381_v21 = vpack.c.bf16 %v289_v19, %v289_v19 }
 0x107   : > { %302 = vst.msk [vmem:[%s170_s27 + $0x4] sm:$0xf] %vm300_vm2, %v381_v21 }
 0x108 PF: > { %s13_s12 = sadd.s32 1, %s435_s12  }
 0x109   : > { %p10_p4 = scmp.ge.s32.totalorder %s13_s12, 4  }
 0x10b   :  { %12 = sbr.rel (!%p10_p4) target bundleno = 1 (0x1), region = 62 }

</bundles_post_ra>
